<compile_context>
chip_gen: v7x
topology: tpu7x:2x2x1
jax: 0.10.0
libtpu: 0.0.40
codegen_flags: <defaults>
</compile_context>

<pallas_src>
import math
import numpy as np
import jax
import jax.numpy as jnp
from jax.experimental import pallas as pl
from jax.experimental.pallas import tpu as pltpu

ALPHA = 0.2          # LeakyReLU negative slope
BN_EPS = 1e-5
NEG_FILL = -9e15


def _leaky(x, alpha=ALPHA):
    return jnp.where(x > 0, x, alpha * x)


def _softmax_rows(x):
    m = jnp.max(x, axis=1, keepdims=True)
    p = jnp.exp(x - m)
    # approx=True (EUP vrcp) risks the 1e-4 reference tolerance; keep exact.
    return p * pl.reciprocal(jnp.sum(p, axis=1, keepdims=True), approx=False)


# --------------------------------------------------------------------------
# Stage 1: projections + attention-logit terms (runs once, single block)
# --------------------------------------------------------------------------
def project_kernel(h1_ref, h2_ref, w1_ref, w2_ref, a1_ref, a2t_ref,
                   wh1_ref, wh2_ref, f1_ref, f2_ref, g1t_ref, g2t_ref):
    wh1 = jnp.dot(h1_ref[...], w1_ref[...], preferred_element_type=jnp.float32)
    wh2 = jnp.dot(h2_ref[...], w2_ref[...], preferred_element_type=jnp.float32)
    wh1_ref[...] = wh1
    wh2_ref[...] = wh2

    # column term of the logits: (N, F) @ (F, 1) -> (N, 1)
    f1_ref[...] = jnp.dot(wh1, a1_ref[...], preferred_element_type=jnp.float32)
    f2_ref[...] = jnp.dot(wh2, a1_ref[...], preferred_element_type=jnp.float32)

    # row term computed directly in row layout: (1, F) contracted against (N, F)
    # on the feature axis -> (1, N).  Avoids an (N,1)->(1,N) XLU relayout;
    # the MXU handles the transposed operand.
    dn = (((1,), (1,)), ((), ()))
    g1t_ref[...] = jax.lax.dot_general(a2t_ref[...], wh1, dn,
                                       preferred_element_type=jnp.float32)
    g2t_ref[...] = jax.lax.dot_general(a2t_ref[...], wh2, dn,
                                       preferred_element_type=jnp.float32)


# --------------------------------------------------------------------------
# Stage 2: row-tiled attention (the O(N^3) / O(N^2 F) work)
# --------------------------------------------------------------------------
def attention_kernel(adj_rows_ref, adj_full_ref, wh1_ref, wh2_ref,
                     f1_ref, f2_ref, g1t_ref, g2t_ref, hp_ref):
    i = pl.program_id(0)
    tq, n = adj_rows_ref.shape

    adj_rows = adj_rows_ref[...]                       # (TQ, N) bf16

    # 2-hop adjacency rows: bf16 MXU operands, f32 accumulation (exact for 0/1 adj).
    adj2_rows = jnp.dot(adj_rows, adj_full_ref[...],
                        preferred_element_type=jnp.float32)

    # Diagonal removal folded into the mask (no extra N^2 where pass / temporary).
    row = jax.lax.broadcasted_iota(jnp.int32, (tq, n), 0) + i * tq
    col = jax.lax.broadcasted_iota(jnp.int32, (tq, n), 1)
    offdiag = row != col

    # e = leakyrelu(f + g^T): column term (TQ,1) + row term (1,N), broadcast add.
    e1 = _leaky(f1_ref[...] + g1t_ref[...])
    e2 = _leaky(f2_ref[...] + g2t_ref[...])

    # adj > 0 mask taken on the bf16 copy: exact for 0/1 adjacency (same
    # assumption as the bf16 adj@adj above).
    att1 = _softmax_rows(jnp.where(adj_rows > 0, e1, NEG_FILL))
    att2 = _softmax_rows(jnp.where((adj2_rows > 0) & offdiag, e2, NEG_FILL))

    # Aggregation kept in f32: bf16 attention probabilities would be faster on
    # v6e/v7x but do not stay within the 1e-4 reference tolerance.
    hp1 = jnp.dot(att1, wh1_ref[...], preferred_element_type=jnp.float32)
    hp2 = jnp.dot(att2, wh2_ref[...], preferred_element_type=jnp.float32)
    # Single lane-contiguous (TQ, 2F) store (the concat the reference does).
    hp_ref[...] = jnp.concatenate([hp1, hp2], axis=1)


# --------------------------------------------------------------------------
# Stage 3: BatchNorm1d (training-mode batch stats, biased variance) + LeakyReLU
# --------------------------------------------------------------------------
def bn_leaky_kernel(hp_ref, gamma_ref, beta_ref, out_ref):
    hp = hp_ref[...]
    mean = jnp.mean(hp, axis=0, keepdims=True)
    var = jnp.mean((hp - mean) ** 2, axis=0, keepdims=True)
    xn = (hp - mean) * jax.lax.rsqrt(var + BN_EPS)
    out_ref[...] = _leaky(xn * gamma_ref[...] + beta_ref[...])


# --------------------------------------------------------------------------
# Wrapper
# --------------------------------------------------------------------------
def _row_tile(n):
    """Largest row-tile (multiple of 8) that divides N; fall back to full N."""
    for t in (256, 128, 64, 32, 16, 8):
        if t < n and n % t == 0:
            return t
    return n


def attention_layer(h, adj, W1, W2, a, gamma, beta):
    n, in_features = h.shape
    d = in_features // 2
    f_out = W1.shape[1]

    # Split / reshape in JAX so every kernel input is a lane-aligned tile
    # (an in-kernel slice at lane offset d would force a VMEM relayout).
    h1 = h[:, :d]
    h2 = h[:, d:]
    a1 = a[:f_out, :]                                  # (F, 1)
    a2t = jnp.reshape(a[f_out:, :], (1, f_out))        # (1, F)
    gamma2d = jnp.reshape(gamma, (1, 2 * f_out))
    beta2d = jnp.reshape(beta, (1, 2 * f_out))
    # bf16 adjacency feeds both the O(N^3) adj@adj matmul and the >0 masks.
    adj_bf16 = adj.astype(jnp.bfloat16)

    full = lambda shape: pl.BlockSpec(shape, lambda i: (0,) * len(shape))

    # ---- stage 1 -----------------------------------------------------------
    proj_out_shapes = (
        jax.ShapeDtypeStruct((n, f_out), jnp.float32),   # wh1
        jax.ShapeDtypeStruct((n, f_out), jnp.float32),   # wh2
        jax.ShapeDtypeStruct((n, 1), jnp.float32),       # f1 (column term)
        jax.ShapeDtypeStruct((n, 1), jnp.float32),       # f2
        jax.ShapeDtypeStruct((1, n), jnp.float32),       # g1^T (row term)
        jax.ShapeDtypeStruct((1, n), jnp.float32),       # g2^T
    )
    proj_args = (h1, h2, W1, W2, a1, a2t)
    wh1, wh2, f1, f2, g1t, g2t = pl.pallas_call(
        project_kernel,
        out_shape=proj_out_shapes,
        grid_spec=pltpu.PrefetchScalarGridSpec(
            num_scalar_prefetch=0,
            grid=(1,),
            in_specs=[full(x.shape) for x in proj_args],
            out_specs=tuple(full(s.shape) for s in proj_out_shapes),
        ),
        compiler_params=pltpu.CompilerParams(
            dimension_semantics=("arbitrary",)),
    )(*proj_args)

    # ---- stage 2: row-tiled, megacore-parallel ------------------------------
    tq = _row_tile(n)
    hp = pl.pallas_call(
        attention_kernel,
        out_shape=jax.ShapeDtypeStruct((n, 2 * f_out), jnp.float32),
        grid_spec=pltpu.PrefetchScalarGridSpec(
            num_scalar_prefetch=0,
            grid=(n // tq,),
            in_specs=[
                pl.BlockSpec((tq, n), lambda i: (i, 0)),       # adj rows (bf16)
                pl.BlockSpec((n, n), lambda i: (0, 0)),        # adj full (bf16, rhs)
                pl.BlockSpec((n, f_out), lambda i: (0, 0)),    # wh1 (values)
                pl.BlockSpec((n, f_out), lambda i: (0, 0)),    # wh2
                pl.BlockSpec((tq, 1), lambda i: (i, 0)),       # f1 rows
                pl.BlockSpec((tq, 1), lambda i: (i, 0)),       # f2 rows
                pl.BlockSpec((1, n), lambda i: (0, 0)),        # g1 row term
                pl.BlockSpec((1, n), lambda i: (0, 0)),        # g2 row term
            ],
            out_specs=pl.BlockSpec((tq, 2 * f_out), lambda i: (i, 0)),
        ),
        compiler_params=pltpu.CompilerParams(
            dimension_semantics=("parallel",),
            # safe scoped-VMEM ceiling on v5e/v6e/v7x alike
            vmem_limit_bytes=32 * 1024 * 1024,
        ),
    )(adj_bf16, adj_bf16, wh1, wh2, f1, f2, g1t, g2t)

    # ---- stage 3 -----------------------------------------------------------
    bn_args = (hp, gamma2d, beta2d)
    out = pl.pallas_call(
        bn_leaky_kernel,
        out_shape=jax.ShapeDtypeStruct((n, 2 * f_out), jnp.float32),
        grid_spec=pltpu.PrefetchScalarGridSpec(
            num_scalar_prefetch=0,
            grid=(1,),
            in_specs=[full(x.shape) for x in bn_args],
            out_specs=full((n, 2 * f_out)),
        ),
        compiler_params=pltpu.CompilerParams(
            dimension_semantics=("arbitrary",)),
    )(*bn_args)
    return out


# --------------------------------------------------------------------------
# Reference + test
# --------------------------------------------------------------------------
def _xavier_uniform(key, shape, gain):
    fan_in, fan_out = shape[0], shape[1]
    bound = gain * math.sqrt(6.0 / (fan_in + fan_out))
    return jax.random.uniform(key, shape, jnp.float32, -bound, bound)


def _reference(h, adj, W1, W2, a, gamma, beta):
    # pure-JAX replica of the PyTorch forward (dropout p=0, training-mode BN)
    d = h.shape[1] // 2
    f_out = W1.shape[1]
    wh1 = h[:, :d] @ W1
    wh2 = h[:, d:] @ W2
    e1 = _leaky(wh1 @ a[:f_out] + (wh1 @ a[f_out:]).T)
    e2 = _leaky(wh2 @ a[:f_out] + (wh2 @ a[f_out:]).T)
    adj2 = adj @ adj
    adj2 = adj2 - jnp.diag(jnp.diag(adj2))
    att1 = jax.nn.softmax(jnp.where(adj > 0, e1, NEG_FILL), axis=1)
    att2 = jax.nn.softmax(jnp.where(adj2 > 0, e2, NEG_FILL), axis=1)
    hp = jnp.concatenate([att1 @ wh1, att2 @ wh2], axis=-1)
    mean = jnp.mean(hp, axis=0, keepdims=True)
    var = jnp.mean((hp - mean) ** 2, axis=0, keepdims=True)
    y = (hp - mean) / jnp.sqrt(var + BN_EPS) * gamma[None, :] + beta[None, :]
    return _leaky(y)


if __name__ == "__main__":
    # small, module-consistent shapes
    N = 16            # nproteins (graph nodes); row tile = 8 -> grid of 2
    IN_FEATURES = 32  # must be even (split in half)
    OUT_FEATURES = 16

    key = jax.random.PRNGKey(0)
    k_h, k_adj, k_w1, k_w2, k_a = jax.random.split(key, 5)

    h = jax.random.normal(k_h, (N, IN_FEATURES), jnp.float32)
    # symmetric-ish sparse adjacency with zero diagonal
    adj_raw = (jax.random.uniform(k_adj, (N, N)) > 0.6).astype(jnp.float32)
    adj = jnp.maximum(adj_raw, adj_raw.T) * (1.0 - jnp.eye(N, dtype=jnp.float32))

    gain = 1.414
    W1 = _xavier_uniform(k_w1, (IN_FEATURES // 2, OUT_FEATURES), gain)
    W2 = _xavier_uniform(k_w2, (IN_FEATURES // 2, OUT_FEATURES), gain)
    a = _xavier_uniform(k_a, (2 * OUT_FEATURES, 1), gain)
    gamma = jnp.ones((2 * OUT_FEATURES,), jnp.float32)   # bn2.weight
    beta = jnp.zeros((2 * OUT_FEATURES,), jnp.float32)   # bn2.bias

    out = attention_layer(h, adj, W1, W2, a, gamma, beta)
    out = jax.block_until_ready(out)

    ref = _reference(h, adj, W1, W2, a, gamma, beta)
    np.testing.assert_allclose(np.asarray(out), np.asarray(ref), rtol=1e-4, atol=1e-4)

    print("KERNEL_OK")
</pallas_src>

<mosaic_0001>
module attributes {stable_mosaic.version = 11 : i64} {
  func.func @project_kernel(%arg0: i32, %arg1: memref<16x16xf32, #tpu.memory_space<vmem>>, %arg2: memref<16x16xf32, #tpu.memory_space<vmem>>, %arg3: memref<16x16xf32, #tpu.memory_space<vmem>>, %arg4: memref<16x16xf32, #tpu.memory_space<vmem>>, %arg5: memref<16x1xf32, #tpu.memory_space<vmem>>, %arg6: memref<1x16xf32, #tpu.memory_space<vmem>>, %arg7: memref<16x16xf32, #tpu.memory_space<vmem>>, %arg8: memref<16x16xf32, #tpu.memory_space<vmem>>, %arg9: memref<16x1xf32, #tpu.memory_space<vmem>>, %arg10: memref<16x1xf32, #tpu.memory_space<vmem>>, %arg11: memref<1x16xf32, #tpu.memory_space<vmem>>, %arg12: memref<1x16xf32, #tpu.memory_space<vmem>>) attributes {dimension_semantics = [#tpu.dimension_semantics<arbitrary>], iteration_bounds = array<i64: 1>, scalar_prefetch = 0 : i64, scratch_operands = 0 : i64, tpu.core_type = #tpu.core_type<tc>, window_params = [{pipeline_mode = #tpu.pipeline_mode<synchronous>, transform_indices = @transform_0, window_bounds = array<i64: 16, 16>}, {pipeline_mode = #tpu.pipeline_mode<synchronous>, transform_indices = @transform_1, window_bounds = array<i64: 16, 16>}, {pipeline_mode = #tpu.pipeline_mode<synchronous>, transform_indices = @transform_2, window_bounds = array<i64: 16, 16>}, {pipeline_mode = #tpu.pipeline_mode<synchronous>, transform_indices = @transform_3, window_bounds = array<i64: 16, 16>}, {pipeline_mode = #tpu.pipeline_mode<synchronous>, transform_indices = @transform_4, window_bounds = array<i64: 16, 1>}, {pipeline_mode = #tpu.pipeline_mode<synchronous>, transform_indices = @transform_5, window_bounds = array<i64: 1, 16>}, {pipeline_mode = #tpu.pipeline_mode<synchronous>, transform_indices = @transform_6, window_bounds = array<i64: 16, 16>}, {pipeline_mode = #tpu.pipeline_mode<synchronous>, transform_indices = @transform_7, window_bounds = array<i64: 16, 16>}, {pipeline_mode = #tpu.pipeline_mode<synchronous>, transform_indices = @transform_8, window_bounds = array<i64: 16, 1>}, {pipeline_mode = #tpu.pipeline_mode<synchronous>, transform_indices = @transform_9, window_bounds = array<i64: 16, 1>}, {pipeline_mode = #tpu.pipeline_mode<synchronous>, transform_indices = @transform_10, window_bounds = array<i64: 1, 16>}, {pipeline_mode = #tpu.pipeline_mode<synchronous>, transform_indices = @transform_11, window_bounds = array<i64: 1, 16>}]} {
    %c0 = arith.constant 0 : index
    %c0_0 = arith.constant 0 : index
    %0 = vector.load %arg1[%c0, %c0_0] : memref<16x16xf32, #tpu.memory_space<vmem>>, vector<16x16xf32>
    %c0_1 = arith.constant 0 : index
    %c0_2 = arith.constant 0 : index
    %1 = vector.load %arg3[%c0_1, %c0_2] : memref<16x16xf32, #tpu.memory_space<vmem>>, vector<16x16xf32>
    %cst = arith.constant dense<0.000000e+00> : vector<16x16xf32>
    %2 = tpu.matmul %0, %1, %cst {dimension_numbers = #tpu.dot_dimension_numbers<[1], [0], [0], [1], [0, 0, 1, 1], [], []>} : vector<16x16xf32>, vector<16x16xf32>, vector<16x16xf32> -> vector<16x16xf32>
    %c0_3 = arith.constant 0 : index
    %c0_4 = arith.constant 0 : index
    %3 = vector.load %arg2[%c0_3, %c0_4] : memref<16x16xf32, #tpu.memory_space<vmem>>, vector<16x16xf32>
    %c0_5 = arith.constant 0 : index
    %c0_6 = arith.constant 0 : index
    %4 = vector.load %arg4[%c0_5, %c0_6] : memref<16x16xf32, #tpu.memory_space<vmem>>, vector<16x16xf32>
    %cst_7 = arith.constant dense<0.000000e+00> : vector<16x16xf32>
    %5 = tpu.matmul %3, %4, %cst_7 {dimension_numbers = #tpu.dot_dimension_numbers<[1], [0], [0], [1], [0, 0, 1, 1], [], []>} : vector<16x16xf32>, vector<16x16xf32>, vector<16x16xf32> -> vector<16x16xf32>
    %c0_8 = arith.constant 0 : index
    %c0_9 = arith.constant 0 : index
    %6 = vector.load %arg7[%c0_8, %c0_9] : memref<16x16xf32, #tpu.memory_space<vmem>>, vector<16x16xf32>
    tpu.vector_store %arg7[%c0_8, %c0_9], %2 {strides = array<i32>} : memref<16x16xf32, #tpu.memory_space<vmem>>, vector<16x16xf32>,
    %c0_10 = arith.constant 0 : index
    %c0_11 = arith.constant 0 : index
    %7 = vector.load %arg8[%c0_10, %c0_11] : memref<16x16xf32, #tpu.memory_space<vmem>>, vector<16x16xf32>
    tpu.vector_store %arg8[%c0_10, %c0_11], %5 {strides = array<i32>} : memref<16x16xf32, #tpu.memory_space<vmem>>, vector<16x16xf32>,
    %c0_12 = arith.constant 0 : index
    %c0_13 = arith.constant 0 : index
    %8 = vector.load %arg5[%c0_12, %c0_13] : memref<16x1xf32, #tpu.memory_space<vmem>>, vector<16x1xf32>
    %cst_14 = arith.constant dense<0.000000e+00> : vector<16x1xf32>
    %9 = tpu.matmul %2, %8, %cst_14 {dimension_numbers = #tpu.dot_dimension_numbers<[1], [0], [0], [1], [0, 0, 1, 1], [], []>} : vector<16x16xf32>, vector<16x1xf32>, vector<16x1xf32> -> vector<16x1xf32>
    %c0_15 = arith.constant 0 : index
    %c0_16 = arith.constant 0 : index
    %10 = vector.load %arg9[%c0_15, %c0_16] : memref<16x1xf32, #tpu.memory_space<vmem>>, vector<16x1xf32>
    tpu.vector_store %arg9[%c0_15, %c0_16], %9 {strides = array<i32>} : memref<16x1xf32, #tpu.memory_space<vmem>>, vector<16x1xf32>,
    %c0_17 = arith.constant 0 : index
    %c0_18 = arith.constant 0 : index
    %11 = vector.load %arg5[%c0_17, %c0_18] : memref<16x1xf32, #tpu.memory_space<vmem>>, vector<16x1xf32>
    %cst_19 = arith.constant dense<0.000000e+00> : vector<16x1xf32>
    %12 = tpu.matmul %5, %11, %cst_19 {dimension_numbers = #tpu.dot_dimension_numbers<[1], [0], [0], [1], [0, 0, 1, 1], [], []>} : vector<16x16xf32>, vector<16x1xf32>, vector<16x1xf32> -> vector<16x1xf32>
    %c0_20 = arith.constant 0 : index
    %c0_21 = arith.constant 0 : index
    %13 = vector.load %arg10[%c0_20, %c0_21] : memref<16x1xf32, #tpu.memory_space<vmem>>, vector<16x1xf32>
    tpu.vector_store %arg10[%c0_20, %c0_21], %12 {strides = array<i32>} : memref<16x1xf32, #tpu.memory_space<vmem>>, vector<16x1xf32>,
    %c0_22 = arith.constant 0 : index
    %c0_23 = arith.constant 0 : index
    %14 = vector.load %arg6[%c0_22, %c0_23] : memref<1x16xf32, #tpu.memory_space<vmem>>, vector<1x16xf32>
    %cst_24 = arith.constant dense<0.000000e+00> : vector<1x16xf32>
    %15 = tpu.matmul %14, %2, %cst_24 {dimension_numbers = #tpu.dot_dimension_numbers<[1], [1], [0], [0], [0, 0, 1, 0], [], []>} : vector<1x16xf32>, vector<16x16xf32>, vector<1x16xf32> -> vector<1x16xf32>
    %c0_25 = arith.constant 0 : index
    %c0_26 = arith.constant 0 : index
    %16 = vector.load %arg11[%c0_25, %c0_26] : memref<1x16xf32, #tpu.memory_space<vmem>>, vector<1x16xf32>
    tpu.vector_store %arg11[%c0_25, %c0_26], %15 {strides = array<i32>} : memref<1x16xf32, #tpu.memory_space<vmem>>, vector<1x16xf32>,
    %c0_27 = arith.constant 0 : index
    %c0_28 = arith.constant 0 : index
    %17 = vector.load %arg6[%c0_27, %c0_28] : memref<1x16xf32, #tpu.memory_space<vmem>>, vector<1x16xf32>
    %cst_29 = arith.constant dense<0.000000e+00> : vector<1x16xf32>
    %18 = tpu.matmul %17, %5, %cst_29 {dimension_numbers = #tpu.dot_dimension_numbers<[1], [1], [0], [0], [0, 0, 1, 0], [], []>} : vector<1x16xf32>, vector<16x16xf32>, vector<1x16xf32> -> vector<1x16xf32>
    %c0_30 = arith.constant 0 : index
    %c0_31 = arith.constant 0 : index
    %19 = vector.load %arg12[%c0_30, %c0_31] : memref<1x16xf32, #tpu.memory_space<vmem>>, vector<1x16xf32>
    tpu.vector_store %arg12[%c0_30, %c0_31], %18 {strides = array<i32>} : memref<1x16xf32, #tpu.memory_space<vmem>>, vector<1x16xf32>,
    return
  }
  func.func @transform_0(%arg0: i32) -> (i32, i32) {
    %c0_i32 = arith.constant 0 : i32
    %c0_i32_0 = arith.constant 0 : i32
    %c0_i32_1 = arith.constant 0 : i32
    return %c0_i32, %c0_i32_0 : i32, i32
  }
  func.func @transform_1(%arg0: i32) -> (i32, i32) {
    %c0_i32 = arith.constant 0 : i32
    %c0_i32_0 = arith.constant 0 : i32
    %c0_i32_1 = arith.constant 0 : i32
    return %c0_i32, %c0_i32_0 : i32, i32
  }
  func.func @transform_2(%arg0: i32) -> (i32, i32) {
    %c0_i32 = arith.constant 0 : i32
    %c0_i32_0 = arith.constant 0 : i32
    %c0_i32_1 = arith.constant 0 : i32
    return %c0_i32, %c0_i32_0 : i32, i32
  }
  func.func @transform_3(%arg0: i32) -> (i32, i32) {
    %c0_i32 = arith.constant 0 : i32
    %c0_i32_0 = arith.constant 0 : i32
    %c0_i32_1 = arith.constant 0 : i32
    return %c0_i32, %c0_i32_0 : i32, i32
  }
  func.func @transform_4(%arg0: i32) -> (i32, i32) {
    %c0_i32 = arith.constant 0 : i32
    %c0_i32_0 = arith.constant 0 : i32
    %c0_i32_1 = arith.constant 0 : i32
    return %c0_i32, %c0_i32_0 : i32, i32
  }
  func.func @transform_5(%arg0: i32) -> (i32, i32) {
    %c0_i32 = arith.constant 0 : i32
    %c0_i32_0 = arith.constant 0 : i32
    %c0_i32_1 = arith.constant 0 : i32
    return %c0_i32, %c0_i32_0 : i32, i32
  }
  func.func @transform_6(%arg0: i32) -> (i32, i32) {
    %c0_i32 = arith.constant 0 : i32
    %c0_i32_0 = arith.constant 0 : i32
    %c0_i32_1 = arith.constant 0 : i32
    return %c0_i32, %c0_i32_0 : i32, i32
  }
  func.func @transform_7(%arg0: i32) -> (i32, i32) {
    %c0_i32 = arith.constant 0 : i32
    %c0_i32_0 = arith.constant 0 : i32
    %c0_i32_1 = arith.constant 0 : i32
    return %c0_i32, %c0_i32_0 : i32, i32
  }
  func.func @transform_8(%arg0: i32) -> (i32, i32) {
    %c0_i32 = arith.constant 0 : i32
    %c0_i32_0 = arith.constant 0 : i32
    %c0_i32_1 = arith.constant 0 : i32
    return %c0_i32, %c0_i32_0 : i32, i32
  }
  func.func @transform_9(%arg0: i32) -> (i32, i32) {
    %c0_i32 = arith.constant 0 : i32
    %c0_i32_0 = arith.constant 0 : i32
    %c0_i32_1 = arith.constant 0 : i32
    return %c0_i32, %c0_i32_0 : i32, i32
  }
  func.func @transform_10(%arg0: i32) -> (i32, i32) {
    %c0_i32 = arith.constant 0 : i32
    %c0_i32_0 = arith.constant 0 : i32
    %c0_i32_1 = arith.constant 0 : i32
    return %c0_i32, %c0_i32_0 : i32, i32
  }
  func.func @transform_11(%arg0: i32) -> (i32, i32) {
    %c0_i32 = arith.constant 0 : i32
    %c0_i32_0 = arith.constant 0 : i32
    %c0_i32_1 = arith.constant 0 : i32
    return %c0_i32, %c0_i32_0 : i32, i32
  }
}

</mosaic_0001>

<bundles_post_ra>
// kernel: tpu_custom_call.1
= control target key start
LH: loop header
LB: loop body
LE: loop exit
PB: predicated region body
PF: predicated region fallthrough
CT: control target
= control target key end

     0   :  { %17 = vsyncpa [#allocation3], 0  ;;  %s1149_s0 = inlined_call_operand.vmem [shape: f32[16,16], index: 0, kind: input, shape index: {}]   ;;  %s1150_s1 = inlined_call_operand.hbm [shape: f32[16,16], index: 1, kind: input, shape index: {}]   ;;  %s1151_s2 = inlined_call_operand.hbm [shape: f32[16,16], index: 2, kind: input, shape index: {}]   ;;  %s1152_s3 = inlined_call_operand.hbm [shape: f32[16,16], index: 3, kind: input, shape index: {}]   ;;  %s1153_s4 = inlined_call_operand.vmem [shape: f32[16,1], index: 4, kind: input, shape index: {}]   ;;  %s1154_s5 = inlined_call_operand.vmem [shape: f32[1,16], index: 5, kind: input, shape index: {}]   ;;  %s1155_s6 = inlined_call_operand.hbm [shape: f32[16,16], index: 6, kind: output, shape index: {0}]   ;;  %s1156_s7 = inlined_call_operand.hbm [shape: f32[16,16], index: 7, kind: output, shape index: {1}]   ;;  %s1157_s8 = inlined_call_operand.vmem [shape: f32[16,1], index: 8, kind: output, shape index: {2}]   ;;  %s1158_s9 = inlined_call_operand.vmem [shape: f32[16,1], index: 9, kind: output, shape index: {3}]   ;;  %s1159_s10 = inlined_call_operand.hbm [shape: f32[1,16], index: 10, kind: output, shape index: {4}]   ;;  %s1160_s11 = inlined_call_operand.hbm [shape: f32[1,16], index: 11, kind: output, shape index: {5}]  }
   0x1   :  { %18 = vsyncpa [#allocation6], 0 }
   0x2   :  { %19 = vsyncpa [#allocation4], 0 }
   0x3   :  { %20 = vsyncpa [#allocation10], 0 }
   0x4   :  { %21 = vsyncpa [#allocation13], 0  ;;  %s917_s17 = smov [#allocation5]   ;;  %s918_s19 = smov [#allocation2]  }
   0x5   :  { %s41_s18 = sshll.u32 %s917_s17, 4  ;;  %s29_s20 = sshll.u32 %s918_s19, 4  ;;  %s42_s18 = int_to_ptr.vmem [resolvable:$true] %s41_s18  ;;  %s989_s20 = int_to_ptr.vmem [resolvable:$true] %s29_s20 }
   0x6   :  { %s753_s23 = scalar_lea.hbm %s1151_s2, 256 }
   0x7   :  { %p754_p0 = scmp.ne.s32.totalorder %s1151_s2, %s753_s23  ;;  %p757_p1 = scmp.lt.u32.totalorder %s753_s23, %s1151_s2 }
   0x9   :  { %p759_p2 = pnand %p757_p1, %p754_p0 }
   0xb   :  { %762 = shalt.err (!%p759_p2)
}
   0xc   :  { %s763_s28 = scalar_lea.vmem %s42_s18, 256  ;;  %p768_p4 = scmp.lt.s32.totalorder %s42_s18, %s42_s18 }
   0xd   :  { %p764_p3 = scmp.ne.s32.totalorder %s42_s18, %s763_s28  ;;  %p769_p5 = scmp.lt.s32.totalorder %s763_s28, %s763_s28 }
   0xf   :  { %p770_p6 = por %p769_p5, %p768_p4 }
  0x11   :  { %p771_p7 = pnand %p770_p6, %p764_p3 }
  0x13   :  { %774 = shalt.err (!%p771_p7)
}
  0x14   :  { %s919_s29 = smov 128   ;;  %s920_s30 = smov 8  }
  0x15   :  { %47 = dma.hbm_to_vmem [thread:$0]  %s1151_s2, 256, %s42_s18, [#allocation6], %s919_s29, %s919_s29, %s920_s30  }
  0x16   :  { %s775_s16 = scalar_lea.hbm %s1150_s1, 256 }
  0x17   :  { %p776_p8 = scmp.ne.s32.totalorder %s1150_s1, %s775_s16  ;;  %p779_p9 = scmp.lt.u32.totalorder %s775_s16, %s1150_s1 }
  0x19   :  { %p781_p10 = pnand %p779_p9, %p776_p8 }
  0x1b   :  { %784 = shalt.err (!%p781_p10)
}
  0x1c   :  { %s785_s23 = scalar_lea.vmem %s989_s20, 256  ;;  %p790_p12 = scmp.lt.s32.totalorder %s989_s20, %s989_s20 }
  0x1d   :  { %p786_p11 = scmp.ne.s32.totalorder %s989_s20, %s785_s23  ;;  %p791_p13 = scmp.lt.s32.totalorder %s785_s23, %s785_s23 }
  0x1f   :  { %p792_p0 = por %p791_p13, %p790_p12 }
  0x21   :  { %p793_p1 = pnand %p792_p0, %p786_p11 }
  0x23   :  { %796 = shalt.err (!%p793_p1)
}
  0x24   :  { %35 = dma.hbm_to_vmem [thread:$0]  %s1150_s1, 256, %s989_s20, [#allocation3], %s919_s29, %s919_s29, %s920_s30  }
  0x25   :  { %s921_s24 = smov [#allocation7]   ;;  %s797_s28 = scalar_lea.hbm %s1152_s3, 256 }
  0x26   :  { %s53_s25 = sshll.u32 %s921_s24, 4  ;;  %p798_p2 = scmp.ne.s32.totalorder %s1152_s3, %s797_s28  ;;  %s54_s25 = int_to_ptr.vmem [resolvable:$true] %s53_s25 }
  0x27   :  { %p801_p3 = scmp.lt.u32.totalorder %s797_s28, %s1152_s3 }
  0x29   :  { %p803_p4 = pnand %p801_p3, %p798_p2 }
  0x2b   :  { %806 = shalt.err (!%p803_p4)
}
  0x2c   :  { %s807_s16 = scalar_lea.vmem %s54_s25, 256  ;;  %p812_p6 = scmp.lt.s32.totalorder %s54_s25, %s54_s25 }
  0x2d   :  { %p808_p5 = scmp.ne.s32.totalorder %s54_s25, %s807_s16  ;;  %p813_p7 = scmp.lt.s32.totalorder %s807_s16, %s807_s16 }
  0x2f   :  { %p814_p8 = por %p813_p7, %p812_p6 }
  0x31   :  { %p815_p9 = pnand %p814_p8, %p808_p5 }
  0x33   :  { %818 = shalt.err (!%p815_p9)
}
  0x34   :  { %59 = dma.hbm_to_vmem [thread:$0]  %s1152_s3, 256, %s54_s25, [#allocation6], %s919_s29, %s919_s29, %s920_s30  }
  0x35   :  { %907 = dma.done.wait [#allocation3], 256  }
  0x36   :  { %908 = vsyncadd [#allocation3], 4294967040 }
  0x37   :  { %909 = dma.done.wait [#allocation6], 512  }
  0x38   :  { %910 = vsyncadd [#allocation6], 4294966784  ;;  %vm77_vm0 = vcmask 130048   ;;  %v75_v0 = vld [vmem:[#allocation5] sm:$0xff]  ;;  %v76_v1 = vld [vmem:[#allocation5 + $0x8] sm:$0xff]  ;;  %v922_v13 = vmov 0.0|0.0  }
  0x39   :  { %v161_v2 = vld [vmem:[#allocation7] sm:$0xff]  ;;  %v717_v3 = vpack.c.bf16 %v76_v1, %v75_v0  ;;  %v162_v4 = vld [vmem:[#allocation7 + $0x8] sm:$0xff]  ;;  %vm735_vm1 = vmpackc.low %vm77_vm0, %vm77_vm0  ;;  %vm923_vm2 = vmmov 0   ;;  %v924_v20 = vmov 0.0   ;;  %s925_s26 = smov [#allocation9]   ;;  %s926_s28 = smov [#allocation8]  }
  0x3a   :  { %v73_v5 = vld [vmem:[%s1149_s0] sm:$0xff]  ;;  %v721_v7 = vpack.c.bf16 %v162_v4, %v161_v2  ;;  %v249_v9 = vld [vmem:[%s1153_s4 + $0x8] sm:$0xff]  ;;  %s587_s27 = sshll.u32 %s925_s26, 4  ;;  %s575_s12 = sshll.u32 %s926_s28, 4  ;;  %s588_s27 = int_to_ptr.vmem [resolvable:$true] %s587_s27  ;;  %s576_s12 = int_to_ptr.vmem [resolvable:$true] %s575_s12 }
  0x3b   :  { %v159_v6 = vld [vmem:[#allocation2] sm:$0xff]  ;;  %679 = vmatprep.mubr.msk.f32.mxu0 %vm77_vm0, %v73_v5  ;;  %718 = vmatprep.subr.bf16.mxu0 %v717_v3  ;;  %v74_v10 = vld [vmem:[%s1149_s0 + $0x8] sm:$0xff]  ;;  %s819_s13 = scalar_lea.vmem %s588_s27, 256  ;;  %p824_p11 = scmp.lt.s32.totalorder %s588_s27, %s588_s27 }
  0x3c   :  { %686 = vmatprep.mubr.msk.f32.mxu1 %vm77_vm0, %v159_v6  ;;  %v248_v8 = vld [vmem:[%s1153_s4] sm:$0xff]  ;;  %722 = vmatprep.subr.bf16.mxu1 %v721_v7  ;;  %v160_v12 = vld [vmem:[#allocation2 + $0x8] sm:$0xff]  ;;  %p820_p10 = scmp.ne.s32.totalorder %s588_s27, %s819_s13  ;;  %p825_p12 = scmp.lt.s32.totalorder %s819_s13, %s819_s13 }
  0x3d   :  { %720 = vmatpush3.bf16.msra.mxu0 %v717_v3  ;;  %v725_v11 = vpack.c.bf16 %v249_v9, %v248_v8  ;;  %724 = vmatpush3.bf16.msra.mxu1 %v721_v7  ;;  %v419_v21 = vld [vmem:[%s1154_s5] sm:$0x1] }
  0x3e   :  { %v495_v22 = vld [vmem:[%s1154_s5] sm:$0x1]  ;;  %p826_p13 = por %p825_p12, %p824_p11 }
  0x3f   :  { %726 = vmatprep.subr.bf16.mxu0 %v725_v11  ;;  %730 = vmatprep.subr.bf16.mxu1 %v725_v11 }
  0x40   :  { %680 = vmatmul.mubr.msk.f32.vlgmr.msra.gmra.mrb[0].mxu0 %vm77_vm0, %v74_v10  ;;  %687 = vmatmul.mubr.msk.f32.vlgmr.msra.gmra.mrb[0].mxu1 %vm77_vm0, %v160_v12  ;;  %p827_p0 = pnand %p826_p13, %p820_p10 }
  0x41   :  { %728 = vmatpush3.bf16.msra.mxu0 %v725_v11  ;;  %732 = vmatpush3.bf16.msra.mxu1 %v725_v11 }
  0x42   :  { %733 = vmatprep.subr.bf16.mxu0 %v922_v13  ;;  %737 = vmatprep.subr.bf16.mxu1 %v922_v13 }
 0x113   :  { %v681_v14 = vpop.f32.mrb[0].mxu0  ;;  %v688_v15 = vpop.f32.mrb[0].mxu1 }
 0x114   :  { %245 = vst.msk [vmem:[#allocation8 + $0x8] sm:$0xff] %vm77_vm0, %v681_v14  ;;  %v150_v16 = vpop.f32.mrb[1].mxu0  ;;  %247 = vst.msk [vmem:[#allocation9 + $0x8] sm:$0xff] %vm77_vm0, %v688_v15  ;;  %v235_v18 = vpop.f32.mrb[1].mxu1 }
 0x115   :  { %v734_v17 = vpack.c.bf16 %v681_v14, %v150_v16  ;;  %244 = vst.msk [vmem:[#allocation8] sm:$0xff] %vm77_vm0, %v150_v16  ;;  %693 = vmatprep.mubr.msk.f32.mxu0 %vm77_vm0, %v150_v16  ;;  %v738_v19 = vpack.c.bf16 %v688_v15, %v235_v18  ;;  %246 = vst.msk [vmem:[#allocation9] sm:$0xff] %vm77_vm0, %v235_v18  ;;  %700 = vmatprep.mubr.msk.f32.mxu1 %vm77_vm0, %v235_v18 }
 0x116   :  { %694 = vmatmul.mubr.msk.f32.vlgmr.msra.gmra.mrb[2].mxu0 %vm77_vm0, %v681_v14  ;;  %701 = vmatmul.mubr.msk.f32.vlgmr.msra.gmra.mrb[2].mxu1 %vm77_vm0, %v688_v15 }
 0x117   :  { %736 = vmatpush3.bf16.xpose.msk.msra.mxu0 %vm735_vm1, %v734_v17  ;;  %740 = vmatpush3.bf16.xpose.msk.msra.mxu1 %vm735_vm1, %v738_v19 }
 0x118   :  { %707 = vmatprep.mubr.msk.f32.mxu0 %vm923_vm2, %v924_v20  ;;  %714 = vmatprep.mubr.msk.f32.mxu1 %vm923_vm2, %v924_v20 }
 0x11e   :  { %708 = vmatmul.mubr.msk.f32.vlgmr.msra.gmra.mrb[4].mxu0 %vm77_vm0, %v419_v21  ;;  %715 = vmatmul.mubr.msk.f32.vlgmr.msra.gmra.mrb[4].mxu1 %vm77_vm0, %v495_v22 }
 0x11f   :  { %830 = shalt.err (!%p827_p0)
}
 0x120   :  { %s831_s5 = scalar_lea.hbm %s1156_s7, 256 }
 0x121   :  { %p832_p1 = scmp.ne.s32.totalorder %s1156_s7, %s831_s5  ;;  %p835_p2 = scmp.lt.u32.totalorder %s831_s5, %s1156_s7 }
 0x123   :  { %p837_p3 = pnand %p835_p2, %p832_p1 }
 0x125   :  { %840 = shalt.err (!%p837_p3)
}
 0x126   :  { %593 = dma.vmem_to_hbm [thread:$0]  %s588_s27, 256, %s1156_s7, [#allocation10], %s919_s29, %s919_s29, %s920_s30  }
 0x127   :  { %s841_s21 = scalar_lea.vmem %s576_s12, 256  ;;  %p846_p5 = scmp.lt.s32.totalorder %s576_s12, %s576_s12 }
 0x128   :  { %p842_p4 = scmp.ne.s32.totalorder %s576_s12, %s841_s21  ;;  %p847_p6 = scmp.lt.s32.totalorder %s841_s21, %s841_s21 }
 0x12a   :  { %p848_p7 = por %p847_p6, %p846_p5 }
 0x12c   :  { %p849_p8 = pnand %p848_p7, %p842_p4 }
 0x12e   :  { %852 = shalt.err (!%p849_p8)
}
 0x12f   :  { %s853_s2 = scalar_lea.hbm %s1155_s6, 256 }
 0x130   :  { %p854_p9 = scmp.ne.s32.totalorder %s1155_s6, %s853_s2  ;;  %p857_p10 = scmp.lt.u32.totalorder %s853_s2, %s1155_s6 }
 0x132   :  { %p859_p11 = pnand %p857_p10, %p854_p9 }
 0x134   :  { %862 = shalt.err (!%p859_p11)
}
 0x135   :  { %581 = dma.vmem_to_hbm [thread:$0]  %s576_s12, 256, %s1155_s6, [#allocation4], %s919_s29, %s919_s29, %s920_s30   ;;  %vm331_vm3 = vcmask 7168   ;;  %vm493_vm4 = vcmask 122880  }
 0x136   :  { %s927_s6 = smov [#allocation11]   ;;  %s928_s30 = smov [#allocation12]  }
 0x137   :  { %s604_s29 = sshll.u32 %s927_s6, 4  ;;  %s614_s12 = sshll.u32 %s928_s30, 4  ;;  %s605_s29 = int_to_ptr.vmem [resolvable:$true] %s604_s29  ;;  %s1117_s12 = int_to_ptr.vmem [resolvable:$true] %s614_s12 }
 0x138   :  { %s867_s1 = scalar_lea.vmem %s605_s29, 32  ;;  %p868_p13 = scmp.lt.s32.totalorder %s605_s29, %s605_s29 }
 0x1e9   :  { %v695_v23 = vpop.f32.mrb[2].mxu0  ;;  %v702_v24 = vpop.f32.mrb[2].mxu1 }
 0x1ea   :  { %333 = vst.msk [vmem:[%s1157_s8 + $0x8] sm:$0xff] %vm331_vm3, %v695_v23  ;;  %v322_v25 = vpop.f32.mrb[3].mxu0  ;;  %418 = vst.msk [vmem:[%s1158_s9 + $0x8] sm:$0xff] %vm331_vm3, %v702_v24  ;;  %v408_v26 = vpop.f32.mrb[3].mxu1 }
 0x1eb   :  { %332 = vst.msk [vmem:[%s1157_s8] sm:$0xff] %vm331_vm3, %v322_v25  ;;  %417 = vst.msk [vmem:[%s1158_s9] sm:$0xff] %vm331_vm3, %v408_v26  ;;  %s863_s8 = scalar_lea.vmem %s605_s29, 16 }
 0x1ec   :  { %p864_p12 = scmp.ne.s32.totalorder %s605_s29, %s863_s8  ;;  %p869_p0 = scmp.lt.s32.totalorder %s867_s1, %s863_s8 }
 0x1ee   :  { %p870_p1 = por %p869_p0, %p868_p13 }
 0x1f0   :  { %p871_p2 = pnand %p870_p1, %p864_p12 }
 0x1f1   :  { %v489_v27 = vpop.f32.mrb[4].mxu0  ;;  %v565_v28 = vpop.f32.mrb[4].mxu1 }
 0x1f2   :  { %494 = vst.msk [vmem:[#allocation11] sm:$0x1] %vm493_vm4, %v489_v27  ;;  %v709_v29 = vpop.f32.mrb[5].mxu0  ;;  %569 = vst.msk [vmem:[#allocation12] sm:$0x1] %vm493_vm4, %v565_v28  ;;  %v716_v30 = vpop.f32.mrb[5].mxu1 }
 0x1f3   :  { %874 = shalt.err (!%p871_p2)
}
 0x1f4   :  { %s875_s17 = scalar_lea.hbm %s1159_s10, 16 }
 0x1f5   :  { %p876_p3 = scmp.ne.s32.totalorder %s1159_s10, %s875_s17  ;;  %p879_p4 = scmp.lt.u32.totalorder %s875_s17, %s1159_s10 }
 0x1f7   :  { %p881_p5 = pnand %p879_p4, %p876_p3 }
 0x1f9   :  { %884 = shalt.err (!%p881_p5)
}
 0x1fa   :  { %607 = dma.vmem_to_hbm [thread:$0]  %s605_s29, 16, %s1159_s10, [#allocation10]  }
 0x1fb   :  { %s885_s18 = scalar_lea.vmem %s1117_s12, 16  ;;  %s889_s0 = scalar_lea.vmem %s1117_s12, 32 }
 0x1fc   :  { %p886_p6 = scmp.ne.s32.totalorder %s1117_s12, %s885_s18  ;;  %p890_p7 = scmp.lt.s32.totalorder %s1117_s12, %s1117_s12 }
 0x1fd   :  { %p891_p8 = scmp.lt.s32.totalorder %s889_s0, %s885_s18 }
 0x1ff   :  { %p892_p9 = por %p891_p8, %p890_p7 }
 0x201   :  { %p893_p10 = pnand %p892_p9, %p886_p6 }
 0x203   :  { %896 = shalt.err (!%p893_p10)
}
 0x204   :  { %s897_s7 = scalar_lea.hbm %s1160_s11, 16 }
 0x205   :  { %p898_p11 = scmp.ne.s32.totalorder %s1160_s11, %s897_s7  ;;  %p901_p12 = scmp.lt.u32.totalorder %s897_s7, %s1160_s11 }
 0x207   :  { %p903_p13 = pnand %p901_p12, %p898_p11 }
 0x209   :  { %906 = shalt.err (!%p903_p13)
}
 0x20a   :  { %617 = dma.vmem_to_hbm [thread:$0]  %s1117_s12, 16, %s1160_s11, [#allocation13]  }
 0x20b   :  { %911 = dma.done.wait [#allocation4], 256  }
 0x20c   :  { %912 = vsyncadd [#allocation4], 4294967040 }
 0x20d   :  { %913 = dma.done.wait [#allocation10], 272  }
 0x20e   :  { %914 = vsyncadd [#allocation10], 4294967024 }
 0x20f   :  { %915 = dma.done.wait [#allocation13], 16  }
 0x210   :  { %916 = vsyncadd [#allocation13], 4294967280 }
 0x211   :  { %634 = vsyncpa [#allocation3], 1 }
 0x212   :  { %635 = vsyncpa [#allocation6], 1 }
 0x213   :  { %636 = vsyncpa [#allocation4], 1 }
 0x214   :  { %637 = vsyncpa [#allocation10], 1 }
 0x215   :  { %638 = vsyncpa [#allocation13], 1 }

</bundles_post_ra>
